<compile_context>
chip_gen: v7x
topology: tpu7x:2x2x1
jax: 0.10.0
libtpu: 0.0.40
codegen_flags: <defaults>
</compile_context>

<pallas_src>
import functools

import jax
import jax.numpy as jnp
from jax.experimental import pallas as pl
from jax.experimental.pallas import tpu as pltpu

TOTAL = 1.0  # conservation target of the constraint-resolving layer


def _round_up(n, m):
    return ((n + m - 1) // m) * m


def resolving_net_kernel(x_ref, w_in_ref, b_in_ref,
                         w_hid_ref, b_hid_ref,
                         w_out_ref, b_out_ref,
                         out_ref, *, cr_in, total):
    # Input layer + activation (normalization was folded into w_in/b_in host-side).
    h = jnp.tanh(
        jnp.dot(x_ref[...], w_in_ref[...], preferred_element_type=jnp.float32)
        + b_in_ref[...])

    # Hidden layers: static unroll (n_hidden is small).  If n_hidden grows beyond ~4,
    # switch to lax.fori_loop with dynamic w_hid_ref[l] indexing to bound live ranges.
    for l in range(w_hid_ref.shape[0]):
        h = jnp.tanh(
            jnp.dot(h, w_hid_ref[l], preferred_element_type=jnp.float32)
            + b_hid_ref[l])

    # Output layer.  w_out/b_out are zero-padded to the lane-dense width, so z already
    # has the padded (TB, out_pad) shape straight off the MXU; padded columns are 0.
    z = (jnp.dot(h, w_out_ref[...], preferred_element_type=jnp.float32)
         + b_out_ref[...])

    # Constraint-resolving layer: column `cr_in` gets the residual so that the first
    # cr_in+1 columns sum to `total`.  Padded z columns are exactly 0, so a full-row
    # sum equals the sum over the real cr_in outputs.
    resid = total - jnp.sum(z, axis=-1, keepdims=True)
    col = jax.lax.broadcasted_iota(jnp.int32, z.shape, 1)
    out_ref[...] = jnp.where(col == cr_in, resid, z)  # single unmasked full-width store


def resolving_net(x, params, *, batch_tile=256, total=TOTAL):
    (mean, std, w_in, b_in, w_hid, b_hid, w_out, b_out) = params
    B, input_dim = x.shape
    H = w_in.shape[1]
    n_hidden = w_hid.shape[0]
    cr_in = w_out.shape[1]
    out_dim = cr_in + 1

    # ---- one-time host-side transforms ---------------------------------------------
    # Fold (x - mean)/std into the first Linear:
    #   ((x - mean)/std) @ W + b == x @ (W * (1/std)^T) + (b - (mean/std) @ W)
    inv_std = 1.0 / std                                   # (1, input_dim)
    w_in_f = w_in * inv_std.reshape(input_dim, 1)
    b_in_f = b_in - (mean * inv_std) @ w_in

    # Lane-dense output: pad output width to a multiple of 128; zero-pad w_out/b_out.
    out_pad = _round_up(out_dim, 128)
    w_out_p = jnp.zeros((H, out_pad), w_out.dtype).at[:, :cr_in].set(w_out)
    b_out_p = jnp.zeros((1, out_pad), b_out.dtype).at[:, :cr_in].set(b_out)

    # Batch tiling: pad batch to a multiple of the tile (sublane-aligned).
    tb = min(batch_tile, _round_up(B, 8))
    b_pad = _round_up(B, tb)
    x_p = x if b_pad == B else jnp.pad(x, ((0, b_pad - B), (0, 0)))

    kernel = functools.partial(resolving_net_kernel, cr_in=cr_in, total=total)
    out_padded = pl.pallas_call(
        kernel,
        out_shape=jax.ShapeDtypeStruct((b_pad, out_pad), jnp.float32),
        grid=(b_pad // tb,),
        in_specs=[
            pl.BlockSpec((tb, input_dim), lambda i: (i, 0)),        # x (batch-tiled)
            pl.BlockSpec((input_dim, H), lambda i: (0, 0)),         # w_in  (VMEM-resident)
            pl.BlockSpec((1, H), lambda i: (0, 0)),                 # b_in
            pl.BlockSpec((n_hidden, H, H), lambda i: (0, 0, 0)),    # w_hid
            pl.BlockSpec((n_hidden, 1, H), lambda i: (0, 0, 0)),    # b_hid
            pl.BlockSpec((H, out_pad), lambda i: (0, 0)),           # w_out (lane-padded)
            pl.BlockSpec((1, out_pad), lambda i: (0, 0)),           # b_out (lane-padded)
        ],
        out_specs=pl.BlockSpec((tb, out_pad), lambda i: (i, 0)),
        compiler_params=pltpu.CompilerParams(
            dimension_semantics=("parallel",),       # megacore / v7x two-TC sharding
            vmem_limit_bytes=64 << 20),
    )(x_p, w_in_f, b_in_f, w_hid, b_hid, w_out_p, b_out_p)

    return out_padded[:B, :out_dim]


def init_params(key, input_dim, hidden_dim, n_hidden, cr_in):
    ks = jax.random.split(key, 8)
    scale = 0.1
    mean = jnp.zeros((1, input_dim), jnp.float32)            # input_mean buffer
    std = jnp.ones((1, input_dim), jnp.float32)              # input_std buffer
    w_in = scale * jax.random.normal(ks[0], (input_dim, hidden_dim), jnp.float32)
    b_in = scale * jax.random.normal(ks[1], (1, hidden_dim), jnp.float32)
    w_hid = scale * jax.random.normal(ks[2], (n_hidden, hidden_dim, hidden_dim), jnp.float32)
    b_hid = scale * jax.random.normal(ks[3], (n_hidden, 1, hidden_dim), jnp.float32)
    w_out = scale * jax.random.normal(ks[4], (hidden_dim, cr_in), jnp.float32)
    b_out = scale * jax.random.normal(ks[5], (1, cr_in), jnp.float32)
    return (mean, std, w_in, b_in, w_hid, b_hid, w_out, b_out)


def resolving_net_reference(x, params):
    """Plain-JAX reference mirroring the PyTorch forward (no folding, no padding)."""
    (mean, std, w_in, b_in, w_hid, b_hid, w_out, b_out) = params
    h = (x - mean) / std
    h = jnp.tanh(h @ w_in + b_in)
    for l in range(w_hid.shape[0]):
        h = jnp.tanh(h @ w_hid[l] + b_hid[l])
    z = h @ w_out + b_out
    resid = TOTAL - jnp.sum(z, axis=-1, keepdims=True)
    return jnp.concatenate([z, resid], axis=-1)


if __name__ == "__main__":
    key = jax.random.PRNGKey(0)
    k_x, k_p = jax.random.split(key)

    # Small shapes consistent with the module:
    #   input_dimension=8, net_topology=[32, 32], cr_in=3, batch=8.
    B, input_dim, hidden_dim, n_hidden, cr_in = 8, 8, 32, 2, 3

    params = init_params(k_p, input_dim, hidden_dim, n_hidden, cr_in)
    x = jax.random.normal(k_x, (B, input_dim), jnp.float32)

    out = resolving_net(x, params)
    jax.block_until_ready(out)

    ref = resolving_net_reference(x, params)
    assert out.shape == (B, cr_in + 1)
    assert jnp.allclose(out, ref, atol=1e-5, rtol=1e-5), "mismatch vs reference"
    # Constraint check: each output row sums to TOTAL.
    assert jnp.allclose(jnp.sum(out, axis=-1), TOTAL, atol=1e-5)

    print("KERNEL_OK")
</pallas_src>

<mosaic_0001>
module attributes {stable_mosaic.version = 11 : i64} {
  func.func @resolving_net_kernel(%arg0: i32, %arg1: memref<8x8xf32, #tpu.memory_space<vmem>>, %arg2: memref<8x32xf32, #tpu.memory_space<vmem>>, %arg3: memref<1x32xf32, #tpu.memory_space<vmem>>, %arg4: memref<2x32x32xf32, #tpu.memory_space<vmem>>, %arg5: memref<2x1x32xf32, #tpu.memory_space<vmem>>, %arg6: memref<32x128xf32, #tpu.memory_space<vmem>>, %arg7: memref<1x128xf32, #tpu.memory_space<vmem>>, %arg8: memref<8x128xf32, #tpu.memory_space<vmem>>) attributes {dimension_semantics = [#tpu.dimension_semantics<parallel>], iteration_bounds = array<i64: 1>, scalar_prefetch = 0 : i64, scratch_operands = 0 : i64, tpu.core_type = #tpu.core_type<tc>, window_params = [{transform_indices = @transform_0, window_bounds = array<i64: 8, 8>}, {pipeline_mode = #tpu.pipeline_mode<synchronous>, transform_indices = @transform_1, window_bounds = array<i64: 8, 32>}, {pipeline_mode = #tpu.pipeline_mode<synchronous>, transform_indices = @transform_2, window_bounds = array<i64: 1, 32>}, {pipeline_mode = #tpu.pipeline_mode<synchronous>, transform_indices = @transform_3, window_bounds = array<i64: 2, 32, 32>}, {pipeline_mode = #tpu.pipeline_mode<synchronous>, transform_indices = @transform_4, window_bounds = array<i64: 2, 1, 32>}, {pipeline_mode = #tpu.pipeline_mode<synchronous>, transform_indices = @transform_5, window_bounds = array<i64: 32, 128>}, {pipeline_mode = #tpu.pipeline_mode<synchronous>, transform_indices = @transform_6, window_bounds = array<i64: 1, 128>}, {transform_indices = @transform_7, window_bounds = array<i64: 8, 128>}]} {
    %c0 = arith.constant 0 : index
    %c0_0 = arith.constant 0 : index
    %0 = vector.load %arg1[%c0, %c0_0] : memref<8x8xf32, #tpu.memory_space<vmem>>, vector<8x8xf32>
    %c0_1 = arith.constant 0 : index
    %c0_2 = arith.constant 0 : index
    %1 = vector.load %arg2[%c0_1, %c0_2] : memref<8x32xf32, #tpu.memory_space<vmem>>, vector<8x32xf32>
    %cst = arith.constant dense<0.000000e+00> : vector<8x32xf32>
    %2 = tpu.matmul %0, %1, %cst {dimension_numbers = #tpu.dot_dimension_numbers<[1], [0], [0], [1], [0, 0, 1, 1], [], []>} : vector<8x8xf32>, vector<8x32xf32>, vector<8x32xf32> -> vector<8x32xf32>
    %c0_3 = arith.constant 0 : index
    %c0_4 = arith.constant 0 : index
    %3 = vector.load %arg3[%c0_3, %c0_4] : memref<1x32xf32, #tpu.memory_space<vmem>>, vector<1x32xf32>
    %4 = vector.broadcast %3 : vector<1x32xf32> to vector<8x32xf32>
    %5 = arith.addf %2, %4 : vector<8x32xf32>
    %6 = math.tanh %5 : vector<8x32xf32>
    %c0_5 = arith.constant 0 : index
    %c0_6 = arith.constant 0 : index
    %c0_7 = arith.constant 0 : index
    %7 = vector.load %arg4[%c0_5, %c0_6, %c0_7] : memref<2x32x32xf32, #tpu.memory_space<vmem>>, vector<1x32x32xf32>
    %8 = vector.shape_cast %7 : vector<1x32x32xf32> to vector<32x32xf32>
    %cst_8 = arith.constant dense<0.000000e+00> : vector<8x32xf32>
    %9 = tpu.matmul %6, %8, %cst_8 {dimension_numbers = #tpu.dot_dimension_numbers<[1], [0], [0], [1], [0, 0, 1, 1], [], []>} : vector<8x32xf32>, vector<32x32xf32>, vector<8x32xf32> -> vector<8x32xf32>
    %c0_9 = arith.constant 0 : index
    %c0_10 = arith.constant 0 : index
    %c0_11 = arith.constant 0 : index
    %10 = vector.load %arg5[%c0_9, %c0_10, %c0_11] : memref<2x1x32xf32, #tpu.memory_space<vmem>>, vector<1x1x32xf32>
    %11 = vector.shape_cast %10 : vector<1x1x32xf32> to vector<1x32xf32>
    %12 = vector.broadcast %11 : vector<1x32xf32> to vector<8x32xf32>
    %13 = arith.addf %9, %12 : vector<8x32xf32>
    %14 = math.tanh %13 : vector<8x32xf32>
    %c1 = arith.constant 1 : index
    %c0_12 = arith.constant 0 : index
    %c0_13 = arith.constant 0 : index
    %15 = vector.load %arg4[%c1, %c0_12, %c0_13] : memref<2x32x32xf32, #tpu.memory_space<vmem>>, vector<1x32x32xf32>
    %16 = vector.shape_cast %15 : vector<1x32x32xf32> to vector<32x32xf32>
    %cst_14 = arith.constant dense<0.000000e+00> : vector<8x32xf32>
    %17 = tpu.matmul %14, %16, %cst_14 {dimension_numbers = #tpu.dot_dimension_numbers<[1], [0], [0], [1], [0, 0, 1, 1], [], []>} : vector<8x32xf32>, vector<32x32xf32>, vector<8x32xf32> -> vector<8x32xf32>
    %c1_15 = arith.constant 1 : index
    %c0_16 = arith.constant 0 : index
    %c0_17 = arith.constant 0 : index
    %18 = vector.load %arg5[%c1_15, %c0_16, %c0_17] : memref<2x1x32xf32, #tpu.memory_space<vmem>>, vector<1x1x32xf32>
    %19 = vector.shape_cast %18 : vector<1x1x32xf32> to vector<1x32xf32>
    %20 = vector.broadcast %19 : vector<1x32xf32> to vector<8x32xf32>
    %21 = arith.addf %17, %20 : vector<8x32xf32>
    %22 = math.tanh %21 : vector<8x32xf32>
    %c0_18 = arith.constant 0 : index
    %c0_19 = arith.constant 0 : index
    %23 = vector.load %arg6[%c0_18, %c0_19] : memref<32x128xf32, #tpu.memory_space<vmem>>, vector<32x128xf32>
    %cst_20 = arith.constant dense<0.000000e+00> : vector<8x128xf32>
    %24 = tpu.matmul %22, %23, %cst_20 {dimension_numbers = #tpu.dot_dimension_numbers<[1], [0], [0], [1], [0, 0, 1, 1], [], []>} : vector<8x32xf32>, vector<32x128xf32>, vector<8x128xf32> -> vector<8x128xf32>
    %c0_21 = arith.constant 0 : index
    %c0_22 = arith.constant 0 : index
    %25 = vector.load %arg7[%c0_21, %c0_22] : memref<1x128xf32, #tpu.memory_space<vmem>>, vector<1x128xf32>
    %26 = vector.broadcast %25 : vector<1x128xf32> to vector<8x128xf32>
    %27 = arith.addf %24, %26 : vector<8x128xf32>
    %cst_23 = arith.constant dense<0.000000e+00> : vector<8xf32>
    %28 = vector.multi_reduction <add>, %27, %cst_23 [1] : vector<8x128xf32> to vector<8xf32>
    %29 = vector.shape_cast %28 : vector<8xf32> to vector<8x1xf32>
    %cst_24 = arith.constant 1.000000e+00 : f32
    %30 = vector.broadcast %cst_24 : f32 to vector<8x1xf32>
    %31 = arith.subf %30, %29 : vector<8x1xf32>
    %32 = tpu.iota {dimensions = array<i32: 1>} : vector<8x128xi32>
    %c3_i32 = arith.constant 3 : i32
    %33 = vector.broadcast %c3_i32 : i32 to vector<8x128xi32>
    %34 = arith.cmpi eq, %32, %33 : vector<8x128xi32>
    %35 = vector.shape_cast %31 : vector<8x1xf32> to vector<8x1xf32>
    %36 = vector.broadcast %35 : vector<8x1xf32> to vector<8x128xf32>
    %37 = arith.select %34, %36, %27 : vector<8x128xi1>, vector<8x128xf32>
    %c0_25 = arith.constant 0 : index
    %c0_26 = arith.constant 0 : index
    %38 = vector.load %arg8[%c0_25, %c0_26] : memref<8x128xf32, #tpu.memory_space<vmem>>, vector<8x128xf32>
    tpu.vector_store %arg8[%c0_25, %c0_26], %37 {strides = array<i32>} : memref<8x128xf32, #tpu.memory_space<vmem>>, vector<8x128xf32>,
    return
  }
  func.func @transform_0(%arg0: i32) -> (i32, i32) {
    %c0_i32 = arith.constant 0 : i32
    %c0_i32_0 = arith.constant 0 : i32
    return %arg0, %c0_i32 : i32, i32
  }
  func.func @transform_1(%arg0: i32) -> (i32, i32) {
    %c0_i32 = arith.constant 0 : i32
    %c0_i32_0 = arith.constant 0 : i32
    %c0_i32_1 = arith.constant 0 : i32
    return %c0_i32, %c0_i32_0 : i32, i32
  }
  func.func @transform_2(%arg0: i32) -> (i32, i32) {
    %c0_i32 = arith.constant 0 : i32
    %c0_i32_0 = arith.constant 0 : i32
    %c0_i32_1 = arith.constant 0 : i32
    return %c0_i32, %c0_i32_0 : i32, i32
  }
  func.func @transform_3(%arg0: i32) -> (i32, i32, i32) {
    %c0_i32 = arith.constant 0 : i32
    %c0_i32_0 = arith.constant 0 : i32
    %c0_i32_1 = arith.constant 0 : i32
    %c0_i32_2 = arith.constant 0 : i32
    return %c0_i32, %c0_i32_0, %c0_i32_1 : i32, i32, i32
  }
  func.func @transform_4(%arg0: i32) -> (i32, i32, i32) {
    %c0_i32 = arith.constant 0 : i32
    %c0_i32_0 = arith.constant 0 : i32
    %c0_i32_1 = arith.constant 0 : i32
    %c0_i32_2 = arith.constant 0 : i32
    return %c0_i32, %c0_i32_0, %c0_i32_1 : i32, i32, i32
  }
  func.func @transform_5(%arg0: i32) -> (i32, i32) {
    %c0_i32 = arith.constant 0 : i32
    %c0_i32_0 = arith.constant 0 : i32
    %c0_i32_1 = arith.constant 0 : i32
    return %c0_i32, %c0_i32_0 : i32, i32
  }
  func.func @transform_6(%arg0: i32) -> (i32, i32) {
    %c0_i32 = arith.constant 0 : i32
    %c0_i32_0 = arith.constant 0 : i32
    %c0_i32_1 = arith.constant 0 : i32
    return %c0_i32, %c0_i32_0 : i32, i32
  }
  func.func @transform_7(%arg0: i32) -> (i32, i32) {
    %c0_i32 = arith.constant 0 : i32
    %c0_i32_0 = arith.constant 0 : i32
    return %arg0, %c0_i32 : i32, i32
  }
}

</mosaic_0001>

<bundles_post_ra>
// kernel: tpu_custom_call.1
= control target key start
LH: loop header
LB: loop body
LE: loop exit
PB: predicated region body
PF: predicated region fallthrough
CT: control target
= control target key end

     0   :  { %12 = vsyncpa [#allocation3], 0  ;;  %s941_s0 = inlined_call_operand.hbm [shape: f32[8,8], index: 0, kind: input, shape index: {}]   ;;  %s942_s1 = inlined_call_operand.hbm [shape: f32[8,32], index: 1, kind: input, shape index: {}]   ;;  %s943_s2 = inlined_call_operand.hbm [shape: f32[1,32], index: 2, kind: input, shape index: {}]   ;;  %s944_s3 = inlined_call_operand.hbm [shape: f32[2,32,32], index: 3, kind: input, shape index: {}]   ;;  %s945_s4 = inlined_call_operand.hbm [shape: f32[2,1,32], index: 4, kind: input, shape index: {}]   ;;  %s946_s5 = inlined_call_operand.hbm [shape: f32[32,128], index: 5, kind: input, shape index: {}]   ;;  %s947_s6 = inlined_call_operand.hbm [shape: f32[1,128], index: 6, kind: input, shape index: {}]   ;;  %s948_s7 = inlined_call_operand.hbm [shape: f32[8,128], index: 7, kind: output, shape index: {}]  }
   0x1   :  { %13 = vsyncpa [#allocation6], 0 }
   0x2   :  { %14 = vsyncpa [#allocation9], 0 }
   0x3   :  { %15 = vsyncpa [#allocation12], 0 }
   0x4   :  { %16 = vsyncpa [#allocation4], 0  ;;  %s769_s24 = smov [#allocation5]   ;;  %s770_s26 = smov [#allocation8]  }
   0x5   :  { %s33_s25 = sshll.u32 %s769_s24, 4  ;;  %s52_s27 = sshll.u32 %s770_s26, 4  ;;  %s34_s25 = int_to_ptr.vmem [resolvable:$true] %s33_s25  ;;  %s824_s27 = int_to_ptr.vmem [resolvable:$true] %s52_s27 }
   0x6   :  { %s583_s30 = scalar_lea.hbm %s942_s1, 128 }
   0x7   :  { %p584_p0 = scmp.ne.s32.totalorder %s942_s1, %s583_s30  ;;  %p587_p1 = scmp.lt.u32.totalorder %s583_s30, %s942_s1 }
   0x9   :  { %p589_p2 = pnand %p587_p1, %p584_p0 }
   0xb   :  { %592 = shalt.err (!%p589_p2)
}
   0xc   :  { %s593_s12 = scalar_lea.vmem %s34_s25, 128  ;;  %p598_p4 = scmp.lt.s32.totalorder %s34_s25, %s34_s25 }
   0xd   :  { %p594_p3 = scmp.ne.s32.totalorder %s34_s25, %s593_s12  ;;  %p599_p5 = scmp.lt.s32.totalorder %s593_s12, %s593_s12 }
   0xf   :  { %p600_p6 = por %p599_p5, %p598_p4 }
  0x11   :  { %p601_p7 = pnand %p600_p6, %p594_p3 }
  0x13   :  { %604 = shalt.err (!%p601_p7)
}
  0x14   :  { %36 = dma.hbm_to_vmem [thread:$0]  %s942_s1, 128, %s34_s25, [#allocation6]  }
  0x15   :  { %s605_s17 = scalar_lea.hbm %s944_s3, 1024 }
  0x16   :  { %p606_p8 = scmp.ne.s32.totalorder %s944_s3, %s605_s17  ;;  %p609_p9 = scmp.lt.u32.totalorder %s605_s17, %s944_s3 }
  0x18   :  { %p611_p10 = pnand %p609_p9, %p606_p8 }
  0x1a   :  { %614 = shalt.err (!%p611_p10)
}
  0x1b   :  { %s615_s22 = scalar_lea.vmem %s824_s27, 1024  ;;  %p620_p12 = scmp.lt.s32.totalorder %s824_s27, %s824_s27 }
  0x1c   :  { %p616_p11 = scmp.ne.s32.totalorder %s824_s27, %s615_s22  ;;  %p621_p13 = scmp.lt.s32.totalorder %s615_s22, %s615_s22 }
  0x1e   :  { %p622_p0 = por %p621_p13, %p620_p12 }
  0x20   :  { %p623_p1 = pnand %p622_p0, %p616_p11 }
  0x22   :  { %626 = shalt.err (!%p623_p1)
}
  0x23   :  { %s771_s1 = smov 128   ;;  %s772_s23 = smov 8  }
  0x24   :  { %58 = dma.hbm_to_vmem [thread:$0]  %s944_s3, 1024, %s824_s27, [#allocation9], %s771_s1, %s771_s1, %s772_s23  }
  0x25   :  { %s773_s26 = smov [#allocation11]   ;;  %s774_s29 = smov [#allocation2]  }
  0x26   :  { %s76_s28 = sshll.u32 %s773_s26, 4  ;;  %s23_s30 = sshll.u32 %s774_s29, 4  ;;  %s77_s28 = int_to_ptr.vmem [resolvable:$true] %s76_s28  ;;  %s24_s30 = int_to_ptr.vmem [resolvable:$true] %s23_s30 }
  0x27   :  { %s627_s10 = scalar_lea.hbm %s946_s5, 512 }
  0x28   :  { %p628_p2 = scmp.ne.s32.totalorder %s946_s5, %s627_s10  ;;  %p631_p3 = scmp.lt.u32.totalorder %s627_s10, %s946_s5 }
  0x2a   :  { %p633_p4 = pnand %p631_p3, %p628_p2 }
  0x2c   :  { %636 = shalt.err (!%p633_p4)
}
  0x2d   :  { %s637_s3 = scalar_lea.vmem %s77_s28, 512  ;;  %p642_p6 = scmp.lt.s32.totalorder %s77_s28, %s77_s28 }
  0x2e   :  { %p638_p5 = scmp.ne.s32.totalorder %s77_s28, %s637_s3  ;;  %p643_p7 = scmp.lt.s32.totalorder %s637_s3, %s637_s3 }
  0x30   :  { %p644_p8 = por %p643_p7, %p642_p6 }
  0x32   :  { %p645_p9 = pnand %p644_p8, %p638_p5 }
  0x34   :  { %648 = shalt.err (!%p645_p9)
}
  0x35   :  { %82 = dma.hbm_to_vmem [thread:$0]  %s946_s5, 512, %s77_s28, [#allocation12], %s771_s1, %s771_s1, %s772_s23  }
  0x36   :  { %s649_s18 = scalar_lea.hbm %s941_s0, 128 }
  0x37   :  { %p650_p10 = scmp.ne.s32.totalorder %s941_s0, %s649_s18  ;;  %p653_p11 = scmp.lt.u32.totalorder %s649_s18, %s941_s0 }
  0x39   :  { %p655_p12 = pnand %p653_p11, %p650_p10 }
  0x3b   :  { %658 = shalt.err (!%p655_p12)
}
  0x3c   :  { %s659_s24 = scalar_lea.vmem %s24_s30, 128  ;;  %p664_p0 = scmp.lt.s32.totalorder %s24_s30, %s24_s30 }
  0x3d   :  { %p660_p13 = scmp.ne.s32.totalorder %s24_s30, %s659_s24  ;;  %p665_p1 = scmp.lt.s32.totalorder %s659_s24, %s659_s24 }
  0x3f   :  { %p666_p2 = por %p665_p1, %p664_p0 }
  0x41   :  { %p667_p3 = pnand %p666_p2, %p660_p13 }
  0x43   :  { %670 = shalt.err (!%p667_p3)
}
  0x44   :  { %26 = dma.hbm_to_vmem [thread:$0]  %s941_s0, 128, %s24_s30, [#allocation3]  }
  0x45   :  { %s775_s23 = smov [#allocation7]   ;;  %s776_s26 = smov [#allocation10]  }
  0x46   :  { %s43_s25 = sshll.u32 %s775_s23, 4  ;;  %s64_s28 = sshll.u32 %s776_s26, 4  ;;  %s44_s25 = int_to_ptr.vmem [resolvable:$true] %s43_s25  ;;  %s879_s28 = int_to_ptr.vmem [resolvable:$true] %s64_s28 }
  0x47   :  { %s671_s9 = scalar_lea.hbm %s943_s2, 16 }
  0x48   :  { %p672_p4 = scmp.ne.s32.totalorder %s943_s2, %s671_s9  ;;  %p675_p5 = scmp.lt.u32.totalorder %s671_s9, %s943_s2 }
  0x4a   :  { %p677_p6 = pnand %p675_p5, %p672_p4 }
  0x4c   :  { %680 = shalt.err (!%p677_p6)
}
  0x4d   :  { %s681_s0 = scalar_lea.vmem %s44_s25, 16  ;;  %s685_s30 = scalar_lea.vmem %s44_s25, 32 }
  0x4e   :  { %p682_p7 = scmp.ne.s32.totalorder %s44_s25, %s681_s0  ;;  %p686_p8 = scmp.lt.s32.totalorder %s44_s25, %s44_s25 }
  0x4f   :  { %p687_p9 = scmp.lt.s32.totalorder %s685_s30, %s681_s0 }
  0x51   :  { %p688_p10 = por %p687_p9, %p686_p8 }
  0x53   :  { %p689_p11 = pnand %p688_p10, %p682_p7 }
  0x55   :  { %692 = shalt.err (!%p689_p11)
}
  0x56   :  { %46 = dma.hbm_to_vmem [thread:$0]  %s943_s2, 16, %s44_s25, [#allocation6]  }
  0x57   :  { %s693_s16 = scalar_lea.hbm %s945_s4, 32 }
  0x58   :  { %p694_p12 = scmp.ne.s32.totalorder %s945_s4, %s693_s16  ;;  %p697_p13 = scmp.lt.u32.totalorder %s693_s16, %s945_s4 }
  0x5a   :  { %p699_p0 = pnand %p697_p13, %p694_p12 }
  0x5c   :  { %702 = shalt.err (!%p699_p0)
}
  0x5d   :  { %s703_s21 = scalar_lea.vmem %s879_s28, 32  ;;  %p708_p2 = scmp.lt.s32.totalorder %s879_s28, %s879_s28 }
  0x5e   :  { %p704_p1 = scmp.ne.s32.totalorder %s879_s28, %s703_s21  ;;  %p709_p3 = scmp.lt.s32.totalorder %s703_s21, %s703_s21 }
  0x60   :  { %p710_p4 = por %p709_p3, %p708_p2 }
  0x62   :  { %p711_p5 = pnand %p710_p4, %p704_p1 }
  0x64   :  { %714 = shalt.err (!%p711_p5)
}
  0x65   :  { %s777_s2 = smov 16   ;;  %s778_s22 = smov 1  }
  0x66   :  { %70 = dma.hbm_to_vmem [thread:$0]  %s945_s4, 32, %s879_s28, [#allocation9], %s777_s2, %s777_s2, %s778_s22  }
  0x67   :  { %s779_s1 = smov [#allocation13]   ;;  %s715_s29 = scalar_lea.hbm %s947_s6, 16 }
  0x68   :  { %s89_s23 = sshll.u32 %s779_s1, 4  ;;  %p716_p6 = scmp.ne.s32.totalorder %s947_s6, %s715_s29  ;;  %s90_s23 = int_to_ptr.vmem [resolvable:$true] %s89_s23 }
  0x69   :  { %p719_p7 = scmp.lt.u32.totalorder %s715_s29, %s947_s6 }
  0x6b   :  { %p721_p8 = pnand %p719_p7, %p716_p6 }
  0x6d   :  { %724 = shalt.err (!%p721_p8)
}
  0x6e   :  { %s725_s12 = scalar_lea.vmem %s90_s23, 16  ;;  %s729_s4 = scalar_lea.vmem %s90_s23, 32 }
  0x6f   :  { %p726_p9 = scmp.ne.s32.totalorder %s90_s23, %s725_s12  ;;  %p730_p10 = scmp.lt.s32.totalorder %s90_s23, %s90_s23 }
  0x70   :  { %p731_p11 = scmp.lt.s32.totalorder %s729_s4, %s725_s12 }
  0x72   :  { %p732_p12 = por %p731_p11, %p730_p10 }
  0x74   :  { %p733_p13 = pnand %p732_p12, %p726_p9 }
  0x76   :  { %736 = shalt.err (!%p733_p13)
}
  0x77   :  { %92 = dma.hbm_to_vmem [thread:$0]  %s947_s6, 16, %s90_s23, [#allocation12]  }
  0x78   :  { %759 = dma.done.wait [#allocation3], 128  }
  0x79   :  { %760 = vsyncadd [#allocation3], 4294967168 }
  0x7a   :  { %761 = dma.done.wait [#allocation6], 144  }
  0x7b   :  { %762 = vsyncadd [#allocation6], 4294967152 }
  0x7c   :  { %763 = dma.done.wait [#allocation9], 1056  }
  0x7d   :  { %764 = vsyncadd [#allocation9], 4294966240 }
  0x7e   :  { %765 = dma.done.wait [#allocation12], 528  }
  0x7f   :  { %766 = vsyncadd [#allocation12], 4294966768  ;;  %v780_v0 = vmov 0.0   ;;  %vm781_vm0 = vmmov 0   ;;  %vm123_vm1 = vcmask 64512   ;;  %v115_v1 = vld [vmem:[#allocation5] sm:$0xff]  ;;  %v458_v41 = vlaneseq }
  0x80   :  { %506 = vmatprep.subr.mxu0 %v780_v0  ;;  %508 = vmatprep.mubr.msk.f32.mxu0 %vm781_vm0, %v780_v0  ;;  %v114_v2 = vld [vmem:[#allocation2] sm:$0xff]  ;;  %v198_v3 = vld [vmem:[#allocation8] sm:$0xff]  ;;  %v782_v6 = vmov 0.0|0.0   ;;  %v201_v8 = vld [vmem:[#allocation8 + $0x18] sm:$0xff]  ;;  %vm209_vm2 = vcmask 261120   ;;  %s783_s6 = smov [#allocation14]  }
  0x81   :  { %519 = vmatprep.mubr.msk.f32.mxu1 %vm781_vm0, %v780_v0  ;;  %507 = vmatpush3.msra.mxu0 %v115_v1  ;;  %v199_v4 = vld [vmem:[#allocation8 + $0x8] sm:$0xff]  ;;  %v200_v5 = vld [vmem:[#allocation8 + $0x10] sm:$0xff]  ;;  %v481_v10 = vld [vmem:[#allocation7] ss:$0 sm:$0xff]  ;;  %v459_v42 = vand.u32 127, %v458_v41  ;;  %s469_s0 = sshll.u32 %s783_s6, 4  ;;  %s470_s0 = int_to_ptr.vmem [resolvable:$true] %s469_s0 }
  0x82   :  { %509 = vmatmul.mubr.msk.f32.vlgmr.msra.gmra.mrb[0].mxu0 %vm123_vm1, %v114_v2  ;;  %544 = vmatprep.subr.bf16.mxu1 %v782_v6  ;;  %v545_v7 = vpack.c.bf16 %v199_v4, %v198_v3  ;;  %v548_v9 = vpack.c.bf16 %v201_v8, %v200_v5  ;;  %v285_v15 = vld [vmem:[#allocation8 + $0x20] sm:$0xff]  ;;  %v286_v16 = vld [vmem:[#allocation8 + $0x28] sm:$0xff]  ;;  %v287_v17 = vld [vmem:[#allocation8 + $0x30] sm:$0xff]  ;;  %s737_s30 = scalar_lea.vmem %s470_s0, 128  ;;  %p742_p1 = scmp.lt.s32.totalorder %s470_s0, %s470_s0 }
  0x83   :  { %530 = vmatprep.mubr.msk.f32.mxu0 %vm781_vm0, %v780_v0  ;;  %550 = vmatprep.subr.bf16.mxu0 %v782_v6  ;;  %v551_v18 = vpack.c.bf16 %v286_v16, %v285_v15  ;;  %v288_v19 = vld [vmem:[#allocation8 + $0x38] sm:$0xff]  ;;  %v483_v21 = vld [vmem:[#allocation10] ss:$0 sm:$0xff]  ;;  %v371_v26 = vld [vmem:[#allocation11] sm:$0xff]  ;;  %vm460_vm3 = vcmp.eq.s32.totalorder %v459_v42, 3  ;;  %p738_p0 = scmp.ne.s32.totalorder %s470_s0, %s737_s30  ;;  %p743_p2 = scmp.lt.s32.totalorder %s737_s30, %s737_s30 }
  0x84   :  { %546 = vmatpush3.bf16.msra.mxu1 %v545_v7  ;;  %v554_v20 = vpack.c.bf16 %v288_v19, %v287_v17  ;;  %v372_v27 = vld [vmem:[#allocation11 + $0x8] sm:$0xff]  ;;  %v373_v28 = vld [vmem:[#allocation11 + $0x10] sm:$0xff]  ;;  %v374_v30 = vld [vmem:[#allocation11 + $0x18] sm:$0xff] }
  0x85   :  { %547 = vmatprep.subr.bf16.mxu1 %v782_v6  ;;  %552 = vmatpush3.bf16.msra.mxu0 %v551_v18  ;;  %v557_v29 = vpack.c.bf16 %v372_v27, %v371_v26  ;;  %v560_v31 = vpack.c.bf16 %v374_v30, %v373_v28  ;;  %v485_v32 = vld [vmem:[#allocation10 + $0x1] ss:$0 sm:$0xff]  ;;  %v487_v37 = vld [vmem:[#allocation13] ss:$0 sm:$0xff]  ;;  %p744_p3 = por %p743_p2, %p742_p1 }
  0x86   :  { %553 = vmatprep.subr.bf16.mxu0 %v782_v6 }
  0x87   :  { %p745_p4 = pnand %p744_p3, %p738_p0 }
  0x88   :  { %549 = vmatpush3.bf16.msra.mxu1 %v548_v9 }
  0x89   :  { %556 = vmatprep.subr.bf16.mxu1 %v782_v6  ;;  %555 = vmatpush3.bf16.msra.mxu0 %v554_v20 }
 0x155   :  { %v193_v11 = vpop.f32.mrb[0].mxu0 }
 0x156   :  { %v194_v12 = vadd.f32 %v481_v10, %v193_v11  ;;  %v510_v13 = vpop.f32.mrb[1].mxu0 }
 0x158   :  { %577 = vtanh.f32 %v194_v12 }
 0x162   :  { %v578_v14 = vpop.eup %577 }
 0x163   :  { %520 = vmatmul.mubr.msk.f32.vlgmr.msra.gmra.mrb[0].mxu1 %vm209_vm2, %v578_v14 }
 0x164   :  { %541 = vmatprep.mubr.msk.f32.mxu1 %vm781_vm0, %v780_v0  ;;  %558 = vmatpush3.bf16.msra.mxu1 %v557_v29 }
 0x165   :  { %559 = vmatprep.subr.bf16.mxu1 %v782_v6 }
 0x168   :  { %561 = vmatpush3.bf16.msra.mxu1 %v560_v31 }
 0x236   :  { %v279_v22 = vpop.f32.mrb[0].mxu1 }
 0x237   :  { %v280_v23 = vadd.f32 %v483_v21, %v279_v22  ;;  %v521_v24 = vpop.f32.mrb[1].mxu1 }
 0x239   :  { %579 = vtanh.f32 %v280_v23 }
 0x243   :  { %v580_v25 = vpop.eup %579 }
 0x244   :  { %531 = vmatmul.mubr.msk.f32.vlgmr.msra.gmra.mrb[2].mxu0 %vm209_vm2, %v580_v25 }
 0x317   :  { %v366_v33 = vpop.f32.mrb[2].mxu0 }
 0x318   :  { %v367_v34 = vadd.f32 %v485_v32, %v366_v33  ;;  %v532_v35 = vpop.f32.mrb[3].mxu0 }
 0x31a   :  { %581 = vtanh.f32 %v367_v34 }
 0x324   :  { %v582_v36 = vpop.eup %581 }
 0x325   :  { %542 = vmatmul.mubr.msk.f32.vlgmr.msra.gmra.mrb[2].mxu1 %vm209_vm2, %v582_v36 }
 0x3f8   :  { %v451_v38 = vpop.f32.mrb[2].mxu1 }
 0x3f9   :  { %v452_v39 = vadd.f32 %v487_v37, %v451_v38  ;;  %v543_v40 = vpop.f32.mrb[3].mxu1 }
 0x3fb   :  { %455 = vadd.xlane.f32.xlu0 %v452_v39 }
 0x488   :  { %v456_v43 = vpop.xlane.xlu0 %455 }
 0x489   :  { %v457_v44 = vsub.f32 1.0, %v456_v43 }
 0x48b   :  { %v461_v45 = vsel %vm460_vm3, %v457_v44, %v452_v39 }
 0x48c   :  { %462 = vst [vmem:[#allocation14] sm:$0xff] %v461_v45 }
 0x48d   :  { %748 = shalt.err (!%p745_p4)
}
 0x48e   :  { %s749_s27 = scalar_lea.hbm %s948_s7, 128 }
 0x48f   :  { %p750_p5 = scmp.ne.s32.totalorder %s948_s7, %s749_s27  ;;  %p753_p6 = scmp.lt.u32.totalorder %s749_s27, %s948_s7 }
 0x491   :  { %p755_p7 = pnand %p753_p6, %p750_p5 }
 0x493   :  { %758 = shalt.err (!%p755_p7)
}
 0x494   :  { %472 = dma.vmem_to_hbm [thread:$0]  %s470_s0, 128, %s948_s7, [#allocation4]  }
 0x495   :  { %767 = dma.done.wait [#allocation4], 128  }
 0x496   :  { %768 = vsyncadd [#allocation4], 4294967168 }
 0x497   :  { %476 = vsyncpa [#allocation3], 1 }
 0x498   :  { %477 = vsyncpa [#allocation6], 1 }
 0x499   :  { %478 = vsyncpa [#allocation9], 1 }
 0x49a   :  { %479 = vsyncpa [#allocation12], 1 }
 0x49b   :  { %480 = vsyncpa [#allocation4], 1 }

</bundles_post_ra>
